<compile_context>
chip_gen: v5e
topology: v5e:2x2
jax: 0.10.0
libtpu: 0.0.40
codegen_flags: <defaults>
</compile_context>

<pallas_src>
import jax
import jax.numpy as jnp
from jax import lax
from jax.experimental import pallas as pl
from jax.experimental.pallas import tpu as pltpu

EPS = 1e-5


def residual_block_kernel(x_ref, b1_ref, g1_ref, be1_ref,
                          b2_ref, g2_ref, be2_ref, pool_ref, a_ref,
                          out_ref, xpad_ref):
    # x_ref:    (N*H, W*C)          input rows, lanes = fused (w, c)
    # b*_ref:   (3, (W+2)*C, W*C)   banded conv matrices, one per kh tap
    # g*/be*:   (1, W*C)            BN gamma / beta pre-tiled along w
    # pool_ref: (W*C, W*C)          0/1 channel-pooling matrix (1 iff same c)
    # a_ref:    (1,)                PReLU alpha, SMEM
    # xpad_ref: (N, H+2, (W+2)*C)   zero-padded scratch shared by both convs
    NH, WC = x_ref.shape
    Nimg, Hp2, WPC = xpad_ref.shape
    H = Hp2 - 2
    C = (WPC - WC) // 2
    W = WC // C
    inv_count = 1.0 / float(NH * W)          # 1 / (N*H*W) elements per channel

    # Zero the shared padded scratch once. At this size (~10 KB) one unmasked
    # fill is cheaper than four masked border stores; the interior is fully
    # overwritten before each conv and the 1-px border stays zero for both.
    xpad_ref[...] = jnp.zeros_like(xpad_ref)

    def conv3x3_bn(b_ref, g_ref, be_ref):
        # 3x3 conv = 3 row-shifted banded matmuls (kw + channel mixing folded
        # into b_ref); the only per-tap work is a sublane-shifted row read.
        acc = jnp.zeros((NH, WC), jnp.float32)
        for kh in range(3):                                   # static unroll
            rows = xpad_ref[:, kh:kh + H, :].reshape(NH, WPC)
            acc = acc + jnp.dot(rows, b_ref[kh],
                                preferred_element_type=jnp.float32)
        # Training-mode BatchNorm2d, single pass: the pooling matmul both sums
        # a channel's (w) copies and re-broadcasts the per-channel result to
        # every (w, c) lane, keeping all BN math lane-dense.
        sum_row = jnp.sum(jnp.dot(acc, pool_ref[...],
                                  preferred_element_type=jnp.float32),
                          axis=0, keepdims=True)              # (1, W*C)
        sq_row = jnp.sum(jnp.dot(acc * acc, pool_ref[...],
                                 preferred_element_type=jnp.float32),
                         axis=0, keepdims=True)               # (1, W*C)
        mean_row = sum_row * inv_count
        var_row = sq_row * inv_count - mean_row * mean_row    # biased variance
        scale_row = g_ref[...] * lax.rsqrt(var_row + EPS)
        shift_row = be_ref[...] - mean_row * scale_row
        return acc * scale_row + shift_row

    x = x_ref[...]                                            # (N*H, W*C)

    # conv1 + bn1
    xpad_ref[:, 1:H + 1, C:WPC - C] = x.reshape(Nimg, H, WC)
    y = conv3x3_bn(b1_ref, g1_ref, be1_ref)

    # PReLU (single shared alpha, scalar read from SMEM)
    alpha = a_ref[0]
    y = jnp.where(y >= 0.0, y, alpha * y)

    # conv2 + bn2 (reuse the padded scratch; border is already zero)
    xpad_ref[:, 1:H + 1, C:WPC - C] = y.reshape(Nimg, H, WC)
    y2 = conv3x3_bn(b2_ref, g2_ref, be2_ref)

    # skip connection
    out_ref[...] = x + y2


def _banded_conv_matrices(weight, width):
    """OIHW (Cout, Cin, 3, 3) -> (3, (width+2)*Cin, width*Cout) banded matrices.

    b[kh, (ow+kw)*Cin + ci, ow*Cout + co] = weight[co, ci, kh, kw]; all other
    entries are zero, so `padded_row(h+kh) @ b[kh]` summed over kh equals the
    3x3 same-padded convolution for output row h.
    """
    cout, cin = weight.shape[0], weight.shape[1]
    wt = jnp.transpose(weight, (2, 3, 1, 0)).astype(jnp.float32)  # (3,3,Cin,Cout)
    pw = jnp.arange(width + 2)[:, None]                           # padded w index
    ow = jnp.arange(width)[None, :]                               # output w index
    kw = pw - ow                                                  # (width+2, width)
    valid = ((kw >= 0) & (kw <= 2)).astype(jnp.float32)
    band = wt[:, jnp.clip(kw, 0, 2)] * valid[None, :, :, None, None]
    # (3, width+2, width, Cin, Cout) -> (3, (width+2)*Cin, width*Cout)
    return jnp.transpose(band, (0, 1, 3, 2, 4)).reshape(
        3, (width + 2) * cin, width * cout)


def residual_block_pallas(x_nchw, params):
    N, C, H, W = x_nchw.shape
    # The skip connection requires Cin == Cout (true for this module).
    assert params["w1"].shape == (C, C, 3, 3) and params["w2"].shape == (C, C, 3, 3)
    WC, WPC = W * C, (W + 2) * C

    # NCHW -> NHWC -> (N*H, W*C); the final reshape is a free contiguous merge.
    x2d = jnp.transpose(x_nchw, (0, 2, 3, 1)).astype(jnp.float32).reshape(N * H, WC)

    b1 = _banded_conv_matrices(params["w1"], W)
    b2 = _banded_conv_matrices(params["w2"], W)

    def tile_c(v):  # (C,) -> (1, W*C) in the fused (w, c) lane order
        return jnp.tile(v.astype(jnp.float32).reshape(1, C), (1, W))

    g1, be1 = tile_c(params["g1"]), tile_c(params["be1"])
    g2, be2 = tile_c(params["g2"]), tile_c(params["be2"])

    cols = jnp.arange(WC)
    pool = (cols[:, None] % C == cols[None, :] % C).astype(jnp.float32)  # (WC, WC)

    alpha = jnp.asarray([params["alpha"]], dtype=jnp.float32)            # SMEM
    # NOTE: conv biases b1/b2 are intentionally NOT passed to the kernel —
    # training-mode BN subtracts the batch mean right after each conv, so a
    # per-channel bias is an exact no-op (verified vs the biased reference).

    vmem = pl.BlockSpec(memory_space=pltpu.MemorySpace.VMEM)
    smem = pl.BlockSpec(memory_space=pltpu.MemorySpace.SMEM)

    out2d = pl.pallas_call(
        residual_block_kernel,
        out_shape=jax.ShapeDtypeStruct((N * H, WC), jnp.float32),
        in_specs=[vmem, vmem, vmem, vmem, vmem, vmem, vmem, vmem, smem],
        out_specs=vmem,
        scratch_shapes=[
            pltpu.VMEM((N, H + 2, WPC), jnp.float32),   # shared padded scratch
        ],
    )(x2d, b1, g1, be1, b2, g2, be2, pool, alpha)

    out = out2d.reshape(N, H, W, C)
    return jnp.transpose(out, (0, 3, 1, 2))                              # NCHW


def residual_block_ref(x, params):
    # pure-JAX reference (NCHW, matches PyTorch training-mode forward, WITH biases)
    def conv(z, w, b):
        y = lax.conv_general_dilated(z, w, (1, 1), ((1, 1), (1, 1)),
                                     dimension_numbers=("NCHW", "OIHW", "NCHW"))
        return y + b.reshape(1, -1, 1, 1)

    def bn(y, g, be):
        mean = y.mean(axis=(0, 2, 3), keepdims=True)
        var = ((y - mean) ** 2).mean(axis=(0, 2, 3), keepdims=True)
        return (y - mean) * lax.rsqrt(var + EPS) * g.reshape(1, -1, 1, 1) \
            + be.reshape(1, -1, 1, 1)

    r = conv(x, params["w1"], params["b1"])
    r = bn(r, params["g1"], params["be1"])
    r = jnp.where(r >= 0.0, r, params["alpha"] * r)
    r = conv(r, params["w2"], params["b2"])
    r = bn(r, params["g2"], params["be2"])
    return x + r


def make_params(channels, key):
    k1, k2, k3, k4 = jax.random.split(key, 4)
    fan_in = channels * 3 * 3
    bound = 1.0 / (fan_in ** 0.5)
    return {
        "w1": jax.random.uniform(k1, (channels, channels, 3, 3), jnp.float32, -bound, bound),
        "b1": jax.random.uniform(k2, (channels,), jnp.float32, -bound, bound),
        "w2": jax.random.uniform(k3, (channels, channels, 3, 3), jnp.float32, -bound, bound),
        "b2": jax.random.uniform(k4, (channels,), jnp.float32, -bound, bound),
        "g1": jnp.ones((channels,), jnp.float32),   # BatchNorm defaults
        "be1": jnp.zeros((channels,), jnp.float32),
        "g2": jnp.ones((channels,), jnp.float32),
        "be2": jnp.zeros((channels,), jnp.float32),
        "alpha": jnp.float32(0.25),                 # nn.PReLU() default
    }


if __name__ == "__main__":
    key = jax.random.PRNGKey(0)
    kx, kp = jax.random.split(key)
    channels, N, H, W = 4, 2, 16, 16

    params = make_params(channels, kp)
    x = jax.random.normal(kx, (N, channels, H, W), jnp.float32)

    out = residual_block_pallas(x, params)
    out = jax.block_until_ready(out)

    ref = residual_block_ref(x, params)
    max_err = float(jnp.max(jnp.abs(out - ref)))
    assert max_err < 1e-3, f"mismatch vs reference: {max_err}"
    print("KERNEL_OK")
</pallas_src>

<mosaic_0001>
module attributes {stable_mosaic.version = 11 : i64} {
  func.func @residual_block_kernel(%arg0: memref<32x64xf32, #tpu.memory_space<vmem>>, %arg1: memref<3x72x64xf32, #tpu.memory_space<vmem>>, %arg2: memref<1x64xf32, #tpu.memory_space<vmem>>, %arg3: memref<1x64xf32, #tpu.memory_space<vmem>>, %arg4: memref<3x72x64xf32, #tpu.memory_space<vmem>>, %arg5: memref<1x64xf32, #tpu.memory_space<vmem>>, %arg6: memref<1x64xf32, #tpu.memory_space<vmem>>, %arg7: memref<64x64xf32, #tpu.memory_space<vmem>>, %arg8: memref<1xf32, #tpu.memory_space<smem>>, %arg9: memref<32x64xf32, #tpu.memory_space<vmem>>, %arg10: memref<2x18x72xf32, #tpu.memory_space<vmem>>) attributes {dimension_semantics = [], scalar_prefetch = 0 : i64, scratch_operands = 1 : i64, tpu.core_type = #tpu.core_type<tc>} {
    %cst = arith.constant 0.000000e+00 : f32
    %0 = vector.broadcast %cst : f32 to vector<2x18x72xf32>
    %c0 = arith.constant 0 : index
    %c0_0 = arith.constant 0 : index
    %c0_1 = arith.constant 0 : index
    %1 = vector.load %arg10[%c0, %c0_0, %c0_1] : memref<2x18x72xf32, #tpu.memory_space<vmem>>, vector<2x18x72xf32>
    tpu.vector_store %arg10[%c0, %c0_0, %c0_1], %0 {strides = array<i32>} : memref<2x18x72xf32, #tpu.memory_space<vmem>>, vector<2x18x72xf32>,
    %c0_2 = arith.constant 0 : index
    %c0_3 = arith.constant 0 : index
    %2 = vector.load %arg0[%c0_2, %c0_3] : memref<32x64xf32, #tpu.memory_space<vmem>>, vector<32x64xf32>
    %3 = vector.shape_cast %2 : vector<32x64xf32> to vector<2x16x64xf32>
    %c0_4 = arith.constant 0 : index
    %c1 = arith.constant 1 : index
    %c4 = arith.constant 4 : index
    %4 = vector.load %arg10[%c0_4, %c1, %c4] : memref<2x18x72xf32, #tpu.memory_space<vmem>>, vector<2x16x64xf32>
    tpu.vector_store %arg10[%c0_4, %c1, %c4], %3 {strides = array<i32>} : memref<2x18x72xf32, #tpu.memory_space<vmem>>, vector<2x16x64xf32>,
    %cst_5 = arith.constant 0.000000e+00 : f32
    %5 = vector.broadcast %cst_5 : f32 to vector<32x64xf32>
    %c0_6 = arith.constant 0 : index
    %c0_7 = arith.constant 0 : index
    %c0_8 = arith.constant 0 : index
    %6 = vector.load %arg10[%c0_6, %c0_7, %c0_8] : memref<2x18x72xf32, #tpu.memory_space<vmem>>, vector<2x16x72xf32>
    %7 = vector.shape_cast %6 : vector<2x16x72xf32> to vector<32x72xf32>
    %c0_9 = arith.constant 0 : index
    %c0_10 = arith.constant 0 : index
    %c0_11 = arith.constant 0 : index
    %8 = vector.load %arg1[%c0_9, %c0_10, %c0_11] : memref<3x72x64xf32, #tpu.memory_space<vmem>>, vector<1x72x64xf32>
    %9 = vector.shape_cast %8 : vector<1x72x64xf32> to vector<72x64xf32>
    %cst_12 = arith.constant dense<0.000000e+00> : vector<32x64xf32>
    %10 = tpu.matmul %7, %9, %cst_12 {dimension_numbers = #tpu.dot_dimension_numbers<[1], [0], [0], [1], [0, 0, 1, 1], [], []>} : vector<32x72xf32>, vector<72x64xf32>, vector<32x64xf32> -> vector<32x64xf32>
    %11 = arith.addf %5, %10 : vector<32x64xf32>
    %c0_13 = arith.constant 0 : index
    %c1_14 = arith.constant 1 : index
    %c0_15 = arith.constant 0 : index
    %12 = vector.load %arg10[%c0_13, %c1_14, %c0_15] : memref<2x18x72xf32, #tpu.memory_space<vmem>>, vector<2x16x72xf32>
    %13 = vector.shape_cast %12 : vector<2x16x72xf32> to vector<32x72xf32>
    %c1_16 = arith.constant 1 : index
    %c0_17 = arith.constant 0 : index
    %c0_18 = arith.constant 0 : index
    %14 = vector.load %arg1[%c1_16, %c0_17, %c0_18] : memref<3x72x64xf32, #tpu.memory_space<vmem>>, vector<1x72x64xf32>
    %15 = vector.shape_cast %14 : vector<1x72x64xf32> to vector<72x64xf32>
    %cst_19 = arith.constant dense<0.000000e+00> : vector<32x64xf32>
    %16 = tpu.matmul %13, %15, %cst_19 {dimension_numbers = #tpu.dot_dimension_numbers<[1], [0], [0], [1], [0, 0, 1, 1], [], []>} : vector<32x72xf32>, vector<72x64xf32>, vector<32x64xf32> -> vector<32x64xf32>
    %17 = arith.addf %11, %16 : vector<32x64xf32>
    %c0_20 = arith.constant 0 : index
    %c2 = arith.constant 2 : index
    %c0_21 = arith.constant 0 : index
    %18 = vector.load %arg10[%c0_20, %c2, %c0_21] : memref<2x18x72xf32, #tpu.memory_space<vmem>>, vector<2x16x72xf32>
    %19 = vector.shape_cast %18 : vector<2x16x72xf32> to vector<32x72xf32>
    %c2_22 = arith.constant 2 : index
    %c0_23 = arith.constant 0 : index
    %c0_24 = arith.constant 0 : index
    %20 = vector.load %arg1[%c2_22, %c0_23, %c0_24] : memref<3x72x64xf32, #tpu.memory_space<vmem>>, vector<1x72x64xf32>
    %21 = vector.shape_cast %20 : vector<1x72x64xf32> to vector<72x64xf32>
    %cst_25 = arith.constant dense<0.000000e+00> : vector<32x64xf32>
    %22 = tpu.matmul %19, %21, %cst_25 {dimension_numbers = #tpu.dot_dimension_numbers<[1], [0], [0], [1], [0, 0, 1, 1], [], []>} : vector<32x72xf32>, vector<72x64xf32>, vector<32x64xf32> -> vector<32x64xf32>
    %23 = arith.addf %17, %22 : vector<32x64xf32>
    %c0_26 = arith.constant 0 : index
    %c0_27 = arith.constant 0 : index
    %24 = vector.load %arg7[%c0_26, %c0_27] : memref<64x64xf32, #tpu.memory_space<vmem>>, vector<64x64xf32>
    %cst_28 = arith.constant dense<0.000000e+00> : vector<32x64xf32>
    %25 = tpu.matmul %23, %24, %cst_28 {dimension_numbers = #tpu.dot_dimension_numbers<[1], [0], [0], [1], [0, 0, 1, 1], [], []>} : vector<32x64xf32>, vector<64x64xf32>, vector<32x64xf32> -> vector<32x64xf32>
    %cst_29 = arith.constant dense<0.000000e+00> : vector<64xf32>
    %26 = vector.multi_reduction <add>, %25, %cst_29 [0] : vector<32x64xf32> to vector<64xf32>
    %27 = vector.shape_cast %26 : vector<64xf32> to vector<1x64xf32>
    %28 = arith.mulf %23, %23 : vector<32x64xf32>
    %c0_30 = arith.constant 0 : index
    %c0_31 = arith.constant 0 : index
    %29 = vector.load %arg7[%c0_30, %c0_31] : memref<64x64xf32, #tpu.memory_space<vmem>>, vector<64x64xf32>
    %cst_32 = arith.constant dense<0.000000e+00> : vector<32x64xf32>
    %30 = tpu.matmul %28, %29, %cst_32 {dimension_numbers = #tpu.dot_dimension_numbers<[1], [0], [0], [1], [0, 0, 1, 1], [], []>} : vector<32x64xf32>, vector<64x64xf32>, vector<32x64xf32> -> vector<32x64xf32>
    %cst_33 = arith.constant dense<0.000000e+00> : vector<64xf32>
    %31 = vector.multi_reduction <add>, %30, %cst_33 [0] : vector<32x64xf32> to vector<64xf32>
    %32 = vector.shape_cast %31 : vector<64xf32> to vector<1x64xf32>
    %cst_34 = arith.constant 0.001953125 : f32
    %33 = vector.broadcast %cst_34 : f32 to vector<1x64xf32>
    %34 = arith.mulf %27, %33 : vector<1x64xf32>
    %cst_35 = arith.constant 0.001953125 : f32
    %35 = vector.broadcast %cst_35 : f32 to vector<1x64xf32>
    %36 = arith.mulf %32, %35 : vector<1x64xf32>
    %37 = arith.mulf %34, %34 : vector<1x64xf32>
    %38 = arith.subf %36, %37 : vector<1x64xf32>
    %c0_36 = arith.constant 0 : index
    %c0_37 = arith.constant 0 : index
    %39 = vector.load %arg2[%c0_36, %c0_37] : memref<1x64xf32, #tpu.memory_space<vmem>>, vector<1x64xf32>
    %cst_38 = arith.constant 9.99999974E-6 : f32
    %40 = vector.broadcast %cst_38 : f32 to vector<1x64xf32>
    %41 = arith.addf %38, %40 : vector<1x64xf32>
    %42 = math.rsqrt %41 : vector<1x64xf32>
    %43 = arith.mulf %39, %42 : vector<1x64xf32>
    %c0_39 = arith.constant 0 : index
    %c0_40 = arith.constant 0 : index
    %44 = vector.load %arg3[%c0_39, %c0_40] : memref<1x64xf32, #tpu.memory_space<vmem>>, vector<1x64xf32>
    %45 = arith.mulf %34, %43 : vector<1x64xf32>
    %46 = arith.subf %44, %45 : vector<1x64xf32>
    %47 = vector.broadcast %43 : vector<1x64xf32> to vector<32x64xf32>
    %48 = arith.mulf %23, %47 : vector<32x64xf32>
    %49 = vector.broadcast %46 : vector<1x64xf32> to vector<32x64xf32>
    %50 = arith.addf %48, %49 : vector<32x64xf32>
    %c0_41 = arith.constant 0 : index
    %51 = memref.load %arg8[%c0_41] : memref<1xf32, #tpu.memory_space<smem>>
    %cst_42 = arith.constant 0.000000e+00 : f32
    %52 = vector.broadcast %cst_42 : f32 to vector<32x64xf32>
    %53 = arith.cmpf oge, %50, %52 : vector<32x64xf32>
    %54 = vector.broadcast %51 : f32 to vector<32x64xf32>
    %55 = arith.mulf %54, %50 : vector<32x64xf32>
    %56 = arith.select %53, %50, %55 : vector<32x64xi1>, vector<32x64xf32>
    %57 = vector.shape_cast %56 : vector<32x64xf32> to vector<2x16x64xf32>
    %c0_43 = arith.constant 0 : index
    %c1_44 = arith.constant 1 : index
    %c4_45 = arith.constant 4 : index
    %58 = vector.load %arg10[%c0_43, %c1_44, %c4_45] : memref<2x18x72xf32, #tpu.memory_space<vmem>>, vector<2x16x64xf32>
    tpu.vector_store %arg10[%c0_43, %c1_44, %c4_45], %57 {strides = array<i32>} : memref<2x18x72xf32, #tpu.memory_space<vmem>>, vector<2x16x64xf32>,
    %cst_46 = arith.constant 0.000000e+00 : f32
    %59 = vector.broadcast %cst_46 : f32 to vector<32x64xf32>
    %c0_47 = arith.constant 0 : index
    %c0_48 = arith.constant 0 : index
    %c0_49 = arith.constant 0 : index
    %60 = vector.load %arg10[%c0_47, %c0_48, %c0_49] : memref<2x18x72xf32, #tpu.memory_space<vmem>>, vector<2x16x72xf32>
    %61 = vector.shape_cast %60 : vector<2x16x72xf32> to vector<32x72xf32>
    %c0_50 = arith.constant 0 : index
    %c0_51 = arith.constant 0 : index
    %c0_52 = arith.constant 0 : index
    %62 = vector.load %arg4[%c0_50, %c0_51, %c0_52] : memref<3x72x64xf32, #tpu.memory_space<vmem>>, vector<1x72x64xf32>
    %63 = vector.shape_cast %62 : vector<1x72x64xf32> to vector<72x64xf32>
    %cst_53 = arith.constant dense<0.000000e+00> : vector<32x64xf32>
    %64 = tpu.matmul %61, %63, %cst_53 {dimension_numbers = #tpu.dot_dimension_numbers<[1], [0], [0], [1], [0, 0, 1, 1], [], []>} : vector<32x72xf32>, vector<72x64xf32>, vector<32x64xf32> -> vector<32x64xf32>
    %65 = arith.addf %59, %64 : vector<32x64xf32>
    %c0_54 = arith.constant 0 : index
    %c1_55 = arith.constant 1 : index
    %c0_56 = arith.constant 0 : index
    %66 = vector.load %arg10[%c0_54, %c1_55, %c0_56] : memref<2x18x72xf32, #tpu.memory_space<vmem>>, vector<2x16x72xf32>
    %67 = vector.shape_cast %66 : vector<2x16x72xf32> to vector<32x72xf32>
    %c1_57 = arith.constant 1 : index
    %c0_58 = arith.constant 0 : index
    %c0_59 = arith.constant 0 : index
    %68 = vector.load %arg4[%c1_57, %c0_58, %c0_59] : memref<3x72x64xf32, #tpu.memory_space<vmem>>, vector<1x72x64xf32>
    %69 = vector.shape_cast %68 : vector<1x72x64xf32> to vector<72x64xf32>
    %cst_60 = arith.constant dense<0.000000e+00> : vector<32x64xf32>
    %70 = tpu.matmul %67, %69, %cst_60 {dimension_numbers = #tpu.dot_dimension_numbers<[1], [0], [0], [1], [0, 0, 1, 1], [], []>} : vector<32x72xf32>, vector<72x64xf32>, vector<32x64xf32> -> vector<32x64xf32>
    %71 = arith.addf %65, %70 : vector<32x64xf32>
    %c0_61 = arith.constant 0 : index
    %c2_62 = arith.constant 2 : index
    %c0_63 = arith.constant 0 : index
    %72 = vector.load %arg10[%c0_61, %c2_62, %c0_63] : memref<2x18x72xf32, #tpu.memory_space<vmem>>, vector<2x16x72xf32>
    %73 = vector.shape_cast %72 : vector<2x16x72xf32> to vector<32x72xf32>
    %c2_64 = arith.constant 2 : index
    %c0_65 = arith.constant 0 : index
    %c0_66 = arith.constant 0 : index
    %74 = vector.load %arg4[%c2_64, %c0_65, %c0_66] : memref<3x72x64xf32, #tpu.memory_space<vmem>>, vector<1x72x64xf32>
    %75 = vector.shape_cast %74 : vector<1x72x64xf32> to vector<72x64xf32>
    %cst_67 = arith.constant dense<0.000000e+00> : vector<32x64xf32>
    %76 = tpu.matmul %73, %75, %cst_67 {dimension_numbers = #tpu.dot_dimension_numbers<[1], [0], [0], [1], [0, 0, 1, 1], [], []>} : vector<32x72xf32>, vector<72x64xf32>, vector<32x64xf32> -> vector<32x64xf32>
    %77 = arith.addf %71, %76 : vector<32x64xf32>
    %c0_68 = arith.constant 0 : index
    %c0_69 = arith.constant 0 : index
    %78 = vector.load %arg7[%c0_68, %c0_69] : memref<64x64xf32, #tpu.memory_space<vmem>>, vector<64x64xf32>
    %cst_70 = arith.constant dense<0.000000e+00> : vector<32x64xf32>
    %79 = tpu.matmul %77, %78, %cst_70 {dimension_numbers = #tpu.dot_dimension_numbers<[1], [0], [0], [1], [0, 0, 1, 1], [], []>} : vector<32x64xf32>, vector<64x64xf32>, vector<32x64xf32> -> vector<32x64xf32>
    %cst_71 = arith.constant dense<0.000000e+00> : vector<64xf32>
    %80 = vector.multi_reduction <add>, %79, %cst_71 [0] : vector<32x64xf32> to vector<64xf32>
    %81 = vector.shape_cast %80 : vector<64xf32> to vector<1x64xf32>
    %82 = arith.mulf %77, %77 : vector<32x64xf32>
    %c0_72 = arith.constant 0 : index
    %c0_73 = arith.constant 0 : index
    %83 = vector.load %arg7[%c0_72, %c0_73] : memref<64x64xf32, #tpu.memory_space<vmem>>, vector<64x64xf32>
    %cst_74 = arith.constant dense<0.000000e+00> : vector<32x64xf32>
    %84 = tpu.matmul %82, %83, %cst_74 {dimension_numbers = #tpu.dot_dimension_numbers<[1], [0], [0], [1], [0, 0, 1, 1], [], []>} : vector<32x64xf32>, vector<64x64xf32>, vector<32x64xf32> -> vector<32x64xf32>
    %cst_75 = arith.constant dense<0.000000e+00> : vector<64xf32>
    %85 = vector.multi_reduction <add>, %84, %cst_75 [0] : vector<32x64xf32> to vector<64xf32>
    %86 = vector.shape_cast %85 : vector<64xf32> to vector<1x64xf32>
    %cst_76 = arith.constant 0.001953125 : f32
    %87 = vector.broadcast %cst_76 : f32 to vector<1x64xf32>
    %88 = arith.mulf %81, %87 : vector<1x64xf32>
    %cst_77 = arith.constant 0.001953125 : f32
    %89 = vector.broadcast %cst_77 : f32 to vector<1x64xf32>
    %90 = arith.mulf %86, %89 : vector<1x64xf32>
    %91 = arith.mulf %88, %88 : vector<1x64xf32>
    %92 = arith.subf %90, %91 : vector<1x64xf32>
    %c0_78 = arith.constant 0 : index
    %c0_79 = arith.constant 0 : index
    %93 = vector.load %arg5[%c0_78, %c0_79] : memref<1x64xf32, #tpu.memory_space<vmem>>, vector<1x64xf32>
    %cst_80 = arith.constant 9.99999974E-6 : f32
    %94 = vector.broadcast %cst_80 : f32 to vector<1x64xf32>
    %95 = arith.addf %92, %94 : vector<1x64xf32>
    %96 = math.rsqrt %95 : vector<1x64xf32>
    %97 = arith.mulf %93, %96 : vector<1x64xf32>
    %c0_81 = arith.constant 0 : index
    %c0_82 = arith.constant 0 : index
    %98 = vector.load %arg6[%c0_81, %c0_82] : memref<1x64xf32, #tpu.memory_space<vmem>>, vector<1x64xf32>
    %99 = arith.mulf %88, %97 : vector<1x64xf32>
    %100 = arith.subf %98, %99 : vector<1x64xf32>
    %101 = vector.broadcast %97 : vector<1x64xf32> to vector<32x64xf32>
    %102 = arith.mulf %77, %101 : vector<32x64xf32>
    %103 = vector.broadcast %100 : vector<1x64xf32> to vector<32x64xf32>
    %104 = arith.addf %102, %103 : vector<32x64xf32>
    %105 = arith.addf %2, %104 : vector<32x64xf32>
    %c0_83 = arith.constant 0 : index
    %c0_84 = arith.constant 0 : index
    %106 = vector.load %arg9[%c0_83, %c0_84] : memref<32x64xf32, #tpu.memory_space<vmem>>, vector<32x64xf32>
    tpu.vector_store %arg9[%c0_83, %c0_84], %105 {strides = array<i32>} : memref<32x64xf32, #tpu.memory_space<vmem>>, vector<32x64xf32>,
    return
  }
}

</mosaic_0001>

<bundles_post_ra>
// kernel: tpu_custom_call.1
= control target key start
LH: loop header
LB: loop body
LE: loop exit
PB: predicated region body
PF: predicated region fallthrough
CT: control target
= control target key end

     0   :  { %s899_s13 = smov 4   ;;  %s1378_s0 = inlined_call_operand.vmem [shape: f32[32,64], index: 0, kind: input, shape index: {}]   ;;  %s1379_s1 = inlined_call_operand.vmem [shape: f32[3,72,64], index: 1, kind: input, shape index: {}]   ;;  %s1380_s2 = inlined_call_operand.vmem [shape: f32[1,64], index: 2, kind: input, shape index: {}]   ;;  %s1381_s3 = inlined_call_operand.vmem [shape: f32[1,64], index: 3, kind: input, shape index: {}]   ;;  %s1382_s4 = inlined_call_operand.vmem [shape: f32[3,72,64], index: 4, kind: input, shape index: {}]   ;;  %s1383_s5 = inlined_call_operand.vmem [shape: f32[1,64], index: 5, kind: input, shape index: {}]   ;;  %s1384_s6 = inlined_call_operand.vmem [shape: f32[1,64], index: 6, kind: input, shape index: {}]   ;;  %s1385_s7 = inlined_call_operand.vmem [shape: f32[64,64], index: 7, kind: input, shape index: {}]   ;;  %s1386_s8 = inlined_call_operand.<no memory space> [shape: f32[1], index: 8, kind: input, shape index: {}]   ;;  %s1387_s9 = inlined_call_operand.hbm [shape: f32[32,64], index: 9, kind: output, shape index: {}]  }
   0x1   :  { %v957_v0 = vld [vmem:[%s1378_s0] sm:$0xff]  ;;  %v962_v1 = vld [vmem:[%s1378_s0 + $0x10] sm:$0xff]  ;;  %v780_v2 = vld [vmem:[%s1379_s1 + $0x88] sm:$0xff] }
   0x2   :  { %50 = vrot.lane.b32.xlu0 %v957_v0, %s899_s13  ;;  %54 = vrot.lane.b32.xlu1 %v962_v1, %s899_s13  ;;  %v79_v3 = vld [vmem:[%s1379_s1 + $0x40] sm:$0xff]  ;;  %v78_v5 = vld [vmem:[%s1379_s1 + $0x38] sm:$0xff] }
   0x3   :  { %113 = vmatpush.msra.mxu0 %v780_v2  ;;  %v779_v4 = vld [vmem:[%s1379_s1 + $0x80] sm:$0xff]  ;;  %154 = vmatpush.msra.mxu1 %v79_v3  ;;  %v778_v6 = vld [vmem:[%s1379_s1 + $0x78] sm:$0xff]  ;;  %v77_v7 = vld [vmem:[%s1379_s1 + $0x30] sm:$0xff] }
   0x4   :  { %v777_v8 = vld [vmem:[%s1379_s1 + $0x70] sm:$0xff] }
   0x5   :  { %114 = vmatpush.msra.mxu0 %v779_v4  ;;  %155 = vmatpush.msra.mxu1 %v78_v5  ;;  %v797_v9 = vld [vmem:[%s1379_s1 + $0xd0] sm:$0xff] }
   0x6   :  { %15 = vsyncpa [#allocation5], 0  ;;  %v995_v10 = vld [vmem:[%s1378_s0 + $0x8] sm:$0xff]  ;;  %v1000_v11 = vld [vmem:[%s1378_s0 + $0x18] sm:$0xff]  ;;  %209 = vmatpush.msra.mxu2 %v797_v9  ;;  %vm34_vm0 = vcmask 588800   ;;  %v900_v15 = vmov 0.0  }
   0x7   :  { %115 = vmatpush.msra.mxu0 %v778_v6  ;;  %156 = vmatpush.msra.mxu1 %v77_v7  ;;  %v76_v12 = vld [vmem:[%s1379_s1 + $0x28] sm:$0xff]  ;;  %v75_v14 = vld [vmem:[%s1379_s1 + $0x20] sm:$0xff]  ;;  %35 = vst.msk [vmem:[#allocation2] sm:$0xff] %vm34_vm0, %v900_v15  ;;  %v74_v17 = vld [vmem:[%s1379_s1 + $0x18] sm:$0xff]  ;;  %vm37_vm1 = vcmask 582656   ;;  %vm62_vm2 = vcmask 556064  }
   0x8   :  { %v776_v13 = vld [vmem:[%s1379_s1 + $0x68] sm:$0xff]  ;;  %36 = vst.msk [vmem:[#allocation2 + $0x8] sm:$0xff] %vm34_vm0, %v900_v15  ;;  %v775_v16 = vld [vmem:[%s1379_s1 + $0x60] sm:$0xff]  ;;  %v774_v19 = vld [vmem:[%s1379_s1 + $0x58] sm:$0xff]  ;;  %vm243_vm3 = vcmask 523264   ;;  %s760_s12 = sshll.u32 %s1387_s9, 4  ;;  %s761_s12 = int_to_ptr.hbm [resolvable:$true] %s760_s12 }
   0x9   :  { %116 = vmatpush.msra.mxu0 %v777_v8  ;;  %157 = vmatpush.msra.mxu1 %v76_v12  ;;  %v796_v18 = vld [vmem:[%s1379_s1 + $0xc8] sm:$0xff]  ;;  %39 = vst.msk [vmem:[#allocation2 + $0x18] sm:$0xff] %vm34_vm0, %v900_v15  ;;  %v73_v20 = vld [vmem:[%s1379_s1 + $0x10] sm:$0xff]  ;;  %v795_v21 = vld [vmem:[%s1379_s1 + $0xc0] sm:$0xff]  ;;  %s902_s14 = smov 128   ;;  %s903_s9 = smov 8  }
   0xa   :  { %52 = vrot.lane.b32.xlu0 %v995_v10, %s899_s13  ;;  %56 = vrot.lane.b32.xlu1 %v1000_v11, %s899_s13  ;;  %40 = vst.msk [vmem:[#allocation2 + $0x20] sm:$0xff] %vm34_vm0, %v900_v15  ;;  %v773_v22 = vld [vmem:[%s1379_s1 + $0x50] sm:$0xff]  ;;  %v72_v23 = vld [vmem:[%s1379_s1 + $0x8] sm:$0xff] }
   0xb   :  { %117 = vmatpush.msra.mxu0 %v776_v13  ;;  %158 = vmatpush.msra.mxu1 %v75_v14  ;;  %v794_v24 = vld [vmem:[%s1379_s1 + $0xb8] sm:$0xff]  ;;  %v772_v25 = vld [vmem:[%s1379_s1 + $0x48] sm:$0xff]  ;;  %v71_v26 = vld [vmem:[%s1379_s1] sm:$0xff]  ;;  %38 = vst.msk [vmem:[#allocation2 + $0x10] sm:$0x3] %vm37_vm1, %v900_v15 }
   0xc   :  { %210 = vmatpush.msra.mxu2 %v796_v18  ;;  %v793_v27 = vld [vmem:[%s1379_s1 + $0xb0] sm:$0xff]  ;;  %41 = vst.msk [vmem:[#allocation2 + $0x28] sm:$0x3] %vm37_vm1, %v900_v15  ;;  %v792_v28 = vld [vmem:[%s1379_s1 + $0xa8] sm:$0xff]  ;;  %v791_v29 = vld [vmem:[%s1379_s1 + $0xa0] sm:$0xff] }
   0xd   :  { %118 = vmatpush.msra.mxu0 %v775_v16  ;;  %159 = vmatpush.msra.mxu1 %v74_v17  ;;  %v790_v30 = vld [vmem:[%s1379_s1 + $0x98] sm:$0xff]  ;;  %v789_v31 = vld [vmem:[%s1379_s1 + $0x90] sm:$0xff]  ;;  %v1098_v50 = vld [vmem:[%s1385_s7 + $0x28] sm:$0xff] }
   0xe   :  { %211 = vmatpush.msra.mxu2 %v795_v21  ;;  %v1086_v48 = vld [vmem:[%s1385_s7 + $0x38] sm:$0xff]  ;;  %v1091_v49 = vld [vmem:[%s1385_s7 + $0x30] sm:$0xff]  ;;  %v1107_v51 = vld [vmem:[%s1385_s7 + $0x20] sm:$0xff] }
   0xf   :  { %119 = vmatpush.msra.mxu0 %v774_v19  ;;  %160 = vmatpush.msra.mxu1 %v73_v20  ;;  %v1113_v52 = vld [vmem:[%s1385_s7 + $0x18] sm:$0xff]  ;;  %v1119_v53 = vld [vmem:[%s1385_s7 + $0x10] sm:$0xff]  ;;  %v1128_v54 = vld [vmem:[%s1385_s7 + $0x8] sm:$0xff] }
  0x10   :  { %212 = vmatpush.msra.mxu2 %v794_v24  ;;  %848 = vmatpush.msra.mxu3 %v1086_v48  ;;  %v1135_v55 = vld [vmem:[%s1385_s7] sm:$0xff] }
  0x11   :  { %120 = vmatpush.msra.mxu0 %v773_v22  ;;  %161 = vmatpush.msra.mxu1 %v72_v23 }
  0x12   :  { %213 = vmatpush.msra.mxu2 %v793_v27  ;;  %849 = vmatpush.msra.mxu3 %v1091_v49 }
  0x13   :  { %121 = vmatpush.msra.mxu0 %v772_v25  ;;  %162 = vmatpush.msra.mxu1 %v71_v26 }
  0x14   :  { %214 = vmatpush.msra.mxu2 %v792_v28  ;;  %850 = vmatpush.msra.mxu3 %v1098_v50 }
  0x16   :  { %215 = vmatpush.msra.mxu2 %v791_v29  ;;  %851 = vmatpush.msra.mxu3 %v1107_v51 }
  0x18   :  { %216 = vmatpush.msra.mxu2 %v790_v30  ;;  %852 = vmatpush.msra.mxu3 %v1113_v52 }
  0x1a   :  { %217 = vmatpush.msra.mxu2 %v789_v31  ;;  %853 = vmatpush.msra.mxu3 %v1119_v53 }
  0x1c   :  { %264 = vmatpush.msrb.mxu2 %v1086_v48  ;;  %854 = vmatpush.msra.mxu3 %v1128_v54 }
  0x1e   :  { %265 = vmatpush.msrb.mxu2 %v1091_v49  ;;  %855 = vmatpush.msra.mxu3 %v1135_v55 }
  0x20   :  { %266 = vmatpush.msrb.mxu2 %v1098_v50  ;;  %322 = vmatpush.msrb.mxu3 %v1086_v48 }
  0x22   :  { %267 = vmatpush.msrb.mxu2 %v1107_v51  ;;  %323 = vmatpush.msrb.mxu3 %v1091_v49 }
  0x24   :  { %268 = vmatpush.msrb.mxu2 %v1113_v52  ;;  %324 = vmatpush.msrb.mxu3 %v1098_v50 }
  0x26   :  { %269 = vmatpush.msrb.mxu2 %v1119_v53  ;;  %325 = vmatpush.msrb.mxu3 %v1107_v51 }
  0x28   :  { %270 = vmatpush.msrb.mxu2 %v1128_v54  ;;  %326 = vmatpush.msrb.mxu3 %v1113_v52 }
  0x2a   :  { %271 = vmatpush.msrb.mxu2 %v1135_v55  ;;  %327 = vmatpush.msrb.mxu3 %v1119_v53 }
  0x2c   :  { %328 = vmatpush.msrb.mxu3 %v1128_v54 }
  0x2e   :  { %329 = vmatpush.msrb.mxu3 %v1135_v55 }
  0x74   :  { %v51_v32 = vpop.permute.xlu0 %50  ;;  %v55_v33 = vpop.permute.xlu1 %54 }
  0x75   :  { %63 = vst.msk [vmem:[#allocation2 + $0x1] sm:$0xff] %vm62_vm2, %v51_v32 }
  0x76   :  { %65 = vst.msk [vmem:[#allocation2 + $0x19] sm:$0xff] %vm62_vm2, %v55_v33 }
  0x7c   :  { %v53_v34 = vpop.permute.xlu0 %52  ;;  %v80_v35 = vld [vmem:[#allocation2 + $0x1] sm:$0xff]  ;;  %v57_v37 = vpop.permute.xlu1 %56 }
  0x7d   :  { %v67_v36 = vld [vmem:[#allocation2] sm:$0xff]  ;;  %64 = vst.msk [vmem:[#allocation2 + $0x9] sm:$0xff] %vm62_vm2, %v53_v34  ;;  %781 = vmatmul.msk.f32.vlgmr.msra.gmra.mxu0 %vm34_vm0, %v80_v35  ;;  %v69_v42 = vld [vmem:[#allocation2 + $0x18] sm:$0xff] }
  0x7e   :  { %785 = vmatmul.msk.f32.vlgmr.msra.gmra.mxu1 %vm34_vm0, %v67_v36  ;;  %66 = vst.msk [vmem:[#allocation2 + $0x21] sm:$0xff] %vm62_vm2, %v57_v37  ;;  %v82_v41 = vld [vmem:[#allocation2 + $0x19] sm:$0xff] }
  0x84   :  { %v81_v38 = vld [vmem:[#allocation2 + $0x9] sm:$0xff] }
  0x85   :  { %v68_v39 = vld [vmem:[#allocation2 + $0x8] sm:$0xff]  ;;  %782 = vmatmul.msk.f32.gmra.mxu0 %vm34_vm0, %v81_v38  ;;  %v70_v45 = vld [vmem:[#allocation2 + $0x20] sm:$0xff] }
  0x86   :  { %v176_v40 = vld [vmem:[#allocation2 + $0x2] sm:$0xff]  ;;  %786 = vmatmul.msk.f32.gmra.mxu1 %vm34_vm0, %v68_v39  ;;  %v177_v43 = vld [vmem:[#allocation2 + $0xa] sm:$0xff]  ;;  %v178_v46 = vld [vmem:[#allocation2 + $0x1a] sm:$0xff] }
  0x87   :  { %798 = vmatmul.msk.f32.vlgmr.msra.gmra.mxu2 %vm34_vm0, %v176_v40  ;;  %v83_v44 = vld [vmem:[#allocation2 + $0x21] sm:$0xff] }
  0x88   :  { %v179_v47 = vld [vmem:[#allocation2 + $0x22] sm:$0xff] }
  0x8d   :  { %783 = vmatmul.msk.f32.gmra.mxu0 %vm34_vm0, %v82_v41 }
  0x8e   :  { %787 = vmatmul.msk.f32.gmra.mxu1 %vm34_vm0, %v69_v42 }
  0x8f   :  { %799 = vmatmul.msk.f32.gmra.mxu2 %vm34_vm0, %v177_v43 }
  0x95   :  { %784 = vmatmul.msk.f32.gmra.mxu0 %vm34_vm0, %v83_v44 }
  0x96   :  { %788 = vmatmul.msk.f32.gmra.mxu1 %vm34_vm0, %v70_v45 }
  0x97   :  { %800 = vmatmul.msk.f32.gmra.mxu2 %vm34_vm0, %v178_v46 }
  0x9f   :  { %801 = vmatmul.msk.f32.gmra.mxu2 %vm34_vm0, %v179_v47 }
  0xfa   :  { %v123_v56 = vpop.f32.mrf.mxu0 }
  0xfb   :  { %v164_v57 = vpop.f32.mrf.mxu1 }
  0xfc   :  { %v165_v58 = vadd.f32 %v164_v57, %v123_v56 }
 0x102   :  { %v126_v59 = vpop.f32.mrf.mxu0 }
 0x103   :  { %v167_v60 = vpop.f32.mrf.mxu1 }
 0x104   :  { %v168_v63 = vadd.f32 %v167_v60, %v126_v59 }
 0x10a   :  { %v219_v61 = vpop.f32.mrf.mxu2  ;;  %v129_v4 = vpop.f32.mrf.mxu0 }
 0x10b   :  { %v1147_v62 = vadd.f32 %v219_v61, %v165_v58  ;;  %v170_v5 = vpop.f32.mrf.mxu1 }
 0x10c   :  { %v171_v6 = vadd.f32 %v170_v5, %v129_v4 }
 0x10d   :  { %802 = vmatmul.msk.f32.vlgmr.msrb.gmra.mxu2 %vm243_vm3, %v1147_v62  ;;  %v298_v16 = vmul.f32 %v1147_v62, %v1147_v62 }
 0x112   :  { %v222_v2 = vpop.f32.mrf.mxu2  ;;  %v132_v9 = vpop.f32.mrf.mxu0 }
 0x113   :  { %v1151_v3 = vadd.f32 %v222_v2, %v168_v63  ;;  %v173_v12 = vpop.f32.mrf.mxu1 }
 0x114   :  { %v174_v13 = vadd.f32 %v173_v12, %v132_v9  ;;  %v818_v12 = vld [vmem:[%s1382_s4 + $0x88] sm:$0xff] }
 0x115   :  { %803 = vmatmul.msk.f32.gmra.mxu2 %vm243_vm3, %v1151_v3  ;;  %v299_v17 = vmul.f32 %v1151_v3, %v1151_v3  ;;  %470 = vmatpush.msrb.mxu0 %v818_v12  ;;  %v830_v12 = vld [vmem:[%s1382_s4 + $0xa8] sm:$0xff] }
 0x11a   :  { %v225_v7 = vpop.f32.mrf.mxu2 }
 0x11b   :  { %v1155_v8 = vadd.f32 %v225_v7, %v171_v6 }
 0x11d   :  { %804 = vmatmul.msk.f32.vlgmr.msra.gmra.mxu3 %vm243_vm3, %v1155_v8  ;;  %v300_v18 = vmul.f32 %v1155_v8, %v1155_v8 }
 0x11e   :  { %620 = vmatpush.msra.mxu3 %v1086_v48 }
 0x120   :  { %621 = vmatpush.msra.mxu3 %v1091_v49 }
 0x122   :  { %v228_v14 = vpop.f32.mrf.mxu2  ;;  %622 = vmatpush.msra.mxu3 %v1098_v50 }
 0x123   :  { %v1162_v15 = vadd.f32 %v228_v14, %v174_v13  ;;  %v436_v13 = vld [vmem:[%s1382_s4 + $0x40] sm:$0xff] }
 0x124   :  { %623 = vmatpush.msra.mxu3 %v1107_v51  ;;  %511 = vmatpush.msrb.mxu1 %v436_v13  ;;  %v829_v13 = vld [vmem:[%s1382_s4 + $0xa0] sm:$0xff] }
 0x125   :  { %805 = vmatmul.msk.f32.gmra.mxu3 %vm243_vm3, %v1162_v15  ;;  %v301_v19 = vmul.f32 %v1162_v15, %v1162_v15 }
 0x126   :  { %624 = vmatpush.msra.mxu3 %v1113_v52 }
 0x128   :  { %625 = vmatpush.msra.mxu3 %v1119_v53 }
 0x12a   :  { %626 = vmatpush.msra.mxu3 %v1128_v54 }
 0x12c   :  { %627 = vmatpush.msra.mxu3 %v1135_v55 }
 0x12d   :  { %806 = vmatmul.msk.f32.vlgmr.msrb.gmra.mxu3 %vm243_vm3, %v298_v16  ;;  %v817_v16 = vld [vmem:[%s1382_s4 + $0x80] sm:$0xff] }
 0x12e   :  { %471 = vmatpush.msrb.mxu0 %v817_v16  ;;  %v827_v16 = vld [vmem:[%s1382_s4 + $0x90] sm:$0xff] }
 0x135   :  { %807 = vmatmul.msk.f32.gmra.mxu3 %vm243_vm3, %v299_v17  ;;  %v435_v17 = vld [vmem:[%s1382_s4 + $0x38] sm:$0xff] }
 0x136   :  { %512 = vmatpush.msrb.mxu1 %v435_v17 }
 0x13d   :  { %808 = vmatmul.msk.f32.gmra.mxu3 %vm243_vm3, %v300_v18  ;;  %v816_v18 = vld [vmem:[%s1382_s4 + $0x78] sm:$0xff] }
 0x13e   :  { %472 = vmatpush.msrb.mxu0 %v816_v18 }
 0x145   :  { %809 = vmatmul.msk.f32.gmra.mxu3 %vm243_vm3, %v301_v19  ;;  %v434_v19 = vld [vmem:[%s1382_s4 + $0x30] sm:$0xff] }
 0x146   :  { %513 = vmatpush.msrb.mxu1 %v434_v19 }
 0x190   :  { %v273_v21 = vpop.f32.mrf.mxu2 }
 0x191   :  { %v285_v26 = vsel %vm243_vm3, %v273_v21, 0.0  ;;  %v835_v21 = vld [vmem:[%s1382_s4 + $0xd0] sm:$0xff] }
 0x192   :  { %566 = vmatpush.msra.mxu2 %v835_v21 }
 0x198   :  { %v276_v23 = vpop.f32.mrf.mxu2 }
 0x199   :  { %v286_v25 = vsel %vm243_vm3, %v276_v23, 0.0  ;;  %v433_v23 = vld [vmem:[%s1382_s4 + $0x28] sm:$0xff] }
 0x19a   :  { %v287_v28 = vadd.f32 %v286_v25, %v285_v26  ;;  %v814_v25 = vld [vmem:[%s1382_s4 + $0x68] sm:$0xff]  ;;  %v432_v26 = vld [vmem:[%s1382_s4 + $0x20] sm:$0xff]  ;;  %514 = vmatpush.msrb.mxu1 %v433_v23 }
 0x19c   :  { %515 = vmatpush.msrb.mxu1 %v432_v26 }
 0x1a0   :  { %v279_v20 = vpop.f32.mrf.mxu3 }
 0x1a1   :  { %v288_v27 = vsel %vm243_vm3, %v279_v20, 0.0 }
 0x1a2   :  { %v289_v30 = vadd.f32 %v288_v27, %v287_v28  ;;  %v360_v28 = vld [vmem:[%s1380_s2] sm:$0x1] }
 0x1a8   :  { %v282_v22 = vpop.f32.mrf.mxu3 }
 0x1a9   :  { %v290_v29 = vsel %vm243_vm3, %v282_v22, 0.0  ;;  %v815_v22 = vld [vmem:[%s1382_s4 + $0x70] sm:$0xff] }
 0x1aa   :  { %v291_v31 = vadd.f32 %v290_v29, %v289_v30  ;;  %473 = vmatpush.msrb.mxu0 %v815_v22 }
 0x1ac   :  { %v292_v33 = vrot.slane %v291_v31, 4  ;;  %474 = vmatpush.msrb.mxu0 %v814_v25 }
 0x1ae   :  { %v293_v34 = vadd.f32 %v292_v33, %v291_v31  ;;  %v373_v31 = vld [vmem:[%s1381_s3] sm:$0x1] }
 0x1b0   :  { %v331_v24 = vpop.f32.mrf.mxu3  ;;  %v294_v37 = vrot.slane %v293_v34, 2 }
 0x1b1   :  { %v343_v38 = vsel %vm243_vm3, %v331_v24, 0.0 }
 0x1b2   :  { %v295_v41 = vadd.f32 %v294_v37, %v293_v34 }
 0x1b4   :  { %v296_v46 = vrot.slane %v295_v41, 1 }
 0x1b6   :  { %v297_v57 = vadd.f32 %v296_v46, %v295_v41 }
 0x1b8   :  { %v334_v32 = vpop.f32.mrf.mxu3  ;;  %v356_v60 = vmul.f32 0.001953125, %v297_v57 }
 0x1b9   :  { %v344_v36 = vsel %vm243_vm3, %v334_v32, 0.0 }
 0x1ba   :  { %v345_v40 = vadd.f32 %v344_v36, %v343_v38  ;;  %v358_v2 = vmul.f32 %v356_v60, %v356_v60 }
 0x1c0   :  { %v337_v35 = vpop.f32.mrf.mxu3 }
 0x1c1   :  { %v346_v39 = vsel %vm243_vm3, %v337_v35, 0.0 }
 0x1c2   :  { %v347_v42 = vadd.f32 %v346_v39, %v345_v40  ;;  %v395_v39 = vstv %s1386_s8 }
 0x1c8   :  { %v340_v43 = vpop.f32.mrf.mxu3 }
 0x1c9   :  { %v348_v44 = vsel %vm243_vm3, %v340_v43, 0.0 }
 0x1ca   :  { %v349_v45 = vadd.f32 %v348_v44, %v347_v42 }
 0x1cc   :  { %v350_v47 = vrot.slane %v349_v45, 4 }
 0x1ce   :  { %v351_v56 = vadd.f32 %v350_v47, %v349_v45 }
 0x1d0   :  { %v352_v58 = vrot.slane %v351_v56, 2 }
 0x1d2   :  { %v353_v59 = vadd.f32 %v352_v58, %v351_v56  ;;  %v813_v58 = vld [vmem:[%s1382_s4 + $0x60] sm:$0xff] }
 0x1d3   :  { %475 = vmatpush.msrb.mxu0 %v813_v58 }
 0x1d4   :  { %v354_v61 = vrot.slane %v353_v59, 1 }
 0x1d6   :  { %v355_v63 = vadd.f32 %v354_v61, %v353_v59  ;;  %v834_v59 = vld [vmem:[%s1382_s4 + $0xc8] sm:$0xff]  ;;  %v430_v61 = vld [vmem:[%s1382_s4 + $0x10] sm:$0xff] }
 0x1d7   :  { %567 = vmatpush.msra.mxu2 %v834_v59 }
 0x1d8   :  { %v357_v4 = vmul.f32 0.001953125, %v355_v63  ;;  %v833_v63 = vld [vmem:[%s1382_s4 + $0xc0] sm:$0xff] }
 0x1d9   :  { %568 = vmatpush.msra.mxu2 %v833_v63 }
 0x1da   :  { %v359_v5 = vsub.f32 %v357_v4, %v358_v2  ;;  %v811_v2 = vld [vmem:[%s1382_s4 + $0x50] sm:$0xff]  ;;  %v429_v4 = vld [vmem:[%s1382_s4 + $0x8] sm:$0xff] }
 0x1dc   :  { %v361_v6 = vadd.f32 1e-05, %v359_v5  ;;  %v832_v5 = vld [vmem:[%s1382_s4 + $0xb8] sm:$0xff] }
 0x1dd   :  { %569 = vmatpush.msra.mxu2 %v832_v5 }
 0x1de   :  { %869 = vrsqrt.f32 %v361_v6  ;;  %vm368_vm5 = vweird.f32 %v361_v6 }
 0x1e4   :  { %v870_v7 = vpop.eup %869 }
 0x1e5   :  { %v363_v9 = vmul.f32 %v870_v7, %v361_v6  ;;  %vm369_vm4 = vweird.f32 %v870_v7  ;;  %v810_v6 = vld [vmem:[%s1382_s4 + $0x48] sm:$0xff] }
 0x1e6   :  { %vm370_vm6 = vmor %vm368_vm5, %vm369_vm4 }
 0x1e7   :  { %v364_v14 = vmul.f32 %v870_v7, %v363_v9  ;;  %v831_v9 = vld [vmem:[%s1382_s4 + $0xb0] sm:$0xff] }
 0x1e8   :  { %570 = vmatpush.msra.mxu2 %v831_v9 }
 0x1e9   :  { %v365_v20 = vmul.f32 0.5, %v364_v14  ;;  %v828_v14 = vld [vmem:[%s1382_s4 + $0x98] sm:$0xff] }
 0x1ea   :  { %571 = vmatpush.msra.mxu2 %v830_v12 }
 0x1eb   :  { %v366_v24 = vsub.f32 1.5, %v365_v20 }
 0x1ec   :  { %572 = vmatpush.msra.mxu2 %v829_v13 }
 0x1ed   :  { %v367_v27 = vmul.f32 %v870_v7, %v366_v24 }
 0x1ee   :  { %573 = vmatpush.msra.mxu2 %v828_v14 }
 0x1ef   :  { %v371_v29 = vsel %vm370_vm6, %v870_v7, %v367_v27  ;;  %v428_v7 = vld [vmem:[%s1382_s4] sm:$0xff] }
 0x1f0   :  { %v372_v30 = vmul.f32 %v371_v29, %v360_v28  ;;  %574 = vmatpush.msra.mxu2 %v827_v16 }
 0x1f2   :  { %v374_v32 = vmul.f32 %v372_v30, %v356_v60  ;;  %v377_v33 = vperm.slane %v372_v30, 0  ;;  %v812_v60 = vld [vmem:[%s1382_s4 + $0x58] sm:$0xff] }
 0x1f3   :  { %476 = vmatpush.msrb.mxu0 %v812_v60 }
 0x1f4   :  { %v375_v34 = vsub.f32 %v373_v31, %v374_v32  ;;  %v382_v35 = vmul.f32 %v377_v33, %v1162_v15  ;;  %v381_v37 = vmul.f32 %v377_v33, %v1155_v8  ;;  %v379_v38 = vmul.f32 %v377_v33, %v1147_v62 }
 0x1f5   :  { %v380_v15 = vmul.f32 %v377_v33, %v1151_v3  ;;  %v431_v3 = vld [vmem:[%s1382_s4 + $0x18] sm:$0xff]  ;;  %477 = vmatpush.msrb.mxu0 %v811_v2 }
 0x1f6   :  { %v384_v36 = vperm.slane %v375_v34, 0  ;;  %516 = vmatpush.msrb.mxu1 %v431_v3 }
 0x1f7   :  { %478 = vmatpush.msrb.mxu0 %v810_v6 }
 0x1f8   :  { %v389_v40 = vadd.f32 %v384_v36, %v382_v35  ;;  %v388_v41 = vadd.f32 %v384_v36, %v381_v37  ;;  %v386_v42 = vadd.f32 %v384_v36, %v379_v38  ;;  %v387_v8 = vadd.f32 %v384_v36, %v380_v15  ;;  %517 = vmatpush.msrb.mxu1 %v430_v61 }
 0x1f9   :  { %678 = vmatpush.msra.mxu0 %v1086_v48 }
 0x1fa   :  { %vm394_vm7 = vcmp.ge.f32.partialorder %v389_v40, 0.0  ;;  %v399_v43 = vmul.f32 %v395_v39, %v389_v40  ;;  %vm393_vm8 = vcmp.ge.f32.partialorder %v388_v41, 0.0  ;;  %v398_v44 = vmul.f32 %v395_v39, %v388_v41  ;;  %518 = vmatpush.msrb.mxu1 %v429_v4 }
 0x1fb   :  { %vm391_vm9 = vcmp.ge.f32.partialorder %v386_v42, 0.0  ;;  %v396_v45 = vmul.f32 %v395_v39, %v386_v42  ;;  %v397_v56 = vmul.f32 %v395_v39, %v387_v8  ;;  %vm392_vm10 = vcmp.ge.f32.partialorder %v387_v8, 0.0  ;;  %679 = vmatpush.msra.mxu0 %v1091_v49 }
 0x1fc   :  { %v403_v46 = vsel %vm394_vm7, %v389_v40, %v399_v43  ;;  %v402_v47 = vsel %vm393_vm8, %v388_v41, %v398_v44  ;;  %519 = vmatpush.msrb.mxu1 %v428_v7 }
 0x1fd   :  { %414 = vrot.lane.b32.xlu1 %v403_v46, %s899_s13  ;;  %412 = vrot.lane.b32.xlu0 %v402_v47, %s899_s13  ;;  %v400_v62 = vsel %vm391_vm9, %v386_v42, %v396_v45  ;;  %v401_v57 = vsel %vm392_vm10, %v387_v8, %v397_v56 }
 0x1fe   :  { %408 = vrot.lane.b32.xlu2 %v400_v62, %s899_s13  ;;  %856 = vmatpush.msra.mxu1 %v1086_v48 }
 0x1ff   :  { %680 = vmatpush.msra.mxu0 %v1098_v50 }
 0x200   :  { %857 = vmatpush.msra.mxu1 %v1091_v49 }
 0x201   :  { %681 = vmatpush.msra.mxu0 %v1107_v51 }
 0x202   :  { %858 = vmatpush.msra.mxu1 %v1098_v50 }
 0x203   :  { %682 = vmatpush.msra.mxu0 %v1113_v52 }
 0x204   :  { %859 = vmatpush.msra.mxu1 %v1107_v51 }
 0x205   :  { %683 = vmatpush.msra.mxu0 %v1119_v53 }
 0x206   :  { %410 = vrot.lane.b32.xlu2 %v401_v57, %s899_s13  ;;  %860 = vmatpush.msra.mxu1 %v1113_v52 }
 0x207   :  { %684 = vmatpush.msra.mxu0 %v1128_v54 }
 0x208   :  { %861 = vmatpush.msra.mxu1 %v1119_v53 }
 0x209   :  { %685 = vmatpush.msra.mxu0 %v1135_v55 }
 0x20a   :  { %862 = vmatpush.msra.mxu1 %v1128_v54 }
 0x20c   :  { %863 = vmatpush.msra.mxu1 %v1135_v55 }
 0x258   :  { %v409_v48 = vpop.permute.xlu2 %408 }
 0x259   :  { %420 = vst.msk [vmem:[#allocation2 + $0x1] sm:$0xff] %vm62_vm2, %v409_v48 }
 0x260   :  { %v411_v49 = vpop.permute.xlu2 %410  ;;  %v437_v50 = vld [vmem:[#allocation2 + $0x1] sm:$0xff] }
 0x261   :  { %v424_v51 = vld [vmem:[#allocation2] sm:$0xff]  ;;  %421 = vst.msk [vmem:[#allocation2 + $0x9] sm:$0xff] %vm62_vm2, %v411_v49  ;;  %819 = vmatmul.msk.f32.vlgmr.msrb.gmra.mxu0 %vm34_vm0, %v437_v50 }
 0x262   :  { %823 = vmatmul.msk.f32.vlgmr.msrb.gmra.mxu1 %vm34_vm0, %v424_v51 }
 0x268   :  { %v438_v52 = vld [vmem:[#allocation2 + $0x9] sm:$0xff] }
 0x269   :  { %v425_v53 = vld [vmem:[#allocation2 + $0x8] sm:$0xff]  ;;  %820 = vmatmul.msk.f32.gmra.mxu0 %vm34_vm0, %v438_v52 }
 0x26a   :  { %v533_v17 = vld [vmem:[#allocation2 + $0x2] sm:$0xff]  ;;  %824 = vmatmul.msk.f32.gmra.mxu1 %vm34_vm0, %v425_v53  ;;  %v534_v18 = vld [vmem:[#allocation2 + $0xa] sm:$0xff] }
 0x26b   :  { %836 = vmatmul.msk.f32.vlgmr.msra.gmra.mxu2 %vm34_vm0, %v533_v17 }
 0x26f   :  { %v415_v54 = vpop.permute.xlu1 %414  ;;  %v413_v55 = vpop.permute.xlu0 %412 }
 0x270   :  { %423 = vst.msk [vmem:[#allocation2 + $0x21] sm:$0xff] %vm62_vm2, %v415_v54 }
 0x271   :  { %422 = vst.msk [vmem:[#allocation2 + $0x19] sm:$0xff] %vm62_vm2, %v413_v55 }
 0x273   :  { %837 = vmatmul.msk.f32.gmra.mxu2 %vm34_vm0, %v534_v18 }
 0x277   :  { %v440_v22 = vld [vmem:[#allocation2 + $0x21] sm:$0xff] }
 0x278   :  { %v439_v19 = vld [vmem:[#allocation2 + $0x19] sm:$0xff]  ;;  %v536_v24 = vld [vmem:[#allocation2 + $0x22] sm:$0xff] }
 0x279   :  { %v426_v20 = vld [vmem:[#allocation2 + $0x18] sm:$0xff]  ;;  %821 = vmatmul.msk.f32.gmra.mxu0 %vm34_vm0, %v439_v19  ;;  %v427_v23 = vld [vmem:[#allocation2 + $0x20] sm:$0xff] }
 0x27a   :  { %v535_v21 = vld [vmem:[#allocation2 + $0x1a] sm:$0xff]  ;;  %825 = vmatmul.msk.f32.gmra.mxu1 %vm34_vm0, %v426_v20 }
 0x27b   :  { %838 = vmatmul.msk.f32.gmra.mxu2 %vm34_vm0, %v535_v21 }
 0x281   :  { %822 = vmatmul.msk.f32.gmra.mxu0 %vm34_vm0, %v440_v22 }
 0x282   :  { %826 = vmatmul.msk.f32.gmra.mxu1 %vm34_vm0, %v427_v23 }
 0x283   :  { %839 = vmatmul.msk.f32.gmra.mxu2 %vm34_vm0, %v536_v24 }
 0x2de   :  { %v480_v25 = vpop.f32.mrf.mxu0 }
 0x2df   :  { %v521_v26 = vpop.f32.mrf.mxu1 }
 0x2e0   :  { %v522_v27 = vadd.f32 %v521_v26, %v480_v25 }
 0x2e6   :  { %v483_v30 = vpop.f32.mrf.mxu0 }
 0x2e7   :  { %v524_v31 = vpop.f32.mrf.mxu1 }
 0x2e8   :  { %v525_v33 = vadd.f32 %v524_v31, %v483_v30 }
 0x2ee   :  { %v576_v28 = vpop.f32.mrf.mxu2 }
 0x2ef   :  { %v1321_v29 = vadd.f32 %v576_v28, %v522_v27 }
 0x2f1   :  { %v654_v32 = vmul.f32 %v1321_v29, %v1321_v29  ;;  %840 = vmatmul.msk.f32.vlgmr.msra.gmra.mxu3 %vm243_vm3, %v1321_v29 }
 0x2f3   :  { %844 = vmatmul.msk.f32.vlgmr.msra.gmra.mxu0 %vm243_vm3, %v654_v32 }
 0x2f6   :  { %v579_v34 = vpop.f32.mrf.mxu2  ;;  %v486_v36 = vpop.f32.mrf.mxu0 }
 0x2f7   :  { %v1328_v35 = vadd.f32 %v579_v34, %v525_v33  ;;  %v527_v37 = vpop.f32.mrf.mxu1  ;;  %v716_v34 = vld [vmem:[%s1383_s5] sm:$0x1]  ;;  %s901_s5 = smov [#allocation4]  }
 0x2f8   :  { %v528_v39 = vadd.f32 %v527_v37, %v486_v36  ;;  %s758_s11 = sshll.u32 %s901_s5, 4  ;;  %s759_s11 = int_to_ptr.vmem [resolvable:$true] %s758_s11 }
 0x2f9   :  { %841 = vmatmul.msk.f32.gmra.mxu3 %vm243_vm3, %v1328_v35  ;;  %v655_v38 = vmul.f32 %v1328_v35, %v1328_v35 }
 0x2fb   :  { %845 = vmatmul.msk.f32.gmra.mxu0 %vm243_vm3, %v655_v38 }
 0x2fe   :  { %v582_v40 = vpop.f32.mrf.mxu2  ;;  %v489_v43 = vpop.f32.mrf.mxu0 }
 0x2ff   :  { %v1335_v41 = vadd.f32 %v582_v40, %v528_v39  ;;  %v530_v44 = vpop.f32.mrf.mxu1  ;;  %v729_v39 = vld [vmem:[%s1384_s6] sm:$0x1] }
 0x300   :  { %v531_v45 = vadd.f32 %v530_v44, %v489_v43 }
 0x301   :  { %v656_v42 = vmul.f32 %v1335_v41, %v1335_v41  ;;  %842 = vmatmul.msk.f32.gmra.mxu3 %vm243_vm3, %v1335_v41 }
 0x303   :  { %846 = vmatmul.msk.f32.vlgmr.msra.gmra.mxu1 %vm243_vm3, %v656_v42 }
 0x306   :  { %v585_v15 = vpop.f32.mrf.mxu2 }
 0x307   :  { %v1342_v46 = vadd.f32 %v585_v15, %v531_v45 }
 0x309   :  { %843 = vmatmul.msk.f32.gmra.mxu3 %vm243_vm3, %v1342_v46  ;;  %v657_v47 = vmul.f32 %v1342_v46, %v1342_v46 }
 0x30b   :  { %847 = vmatmul.msk.f32.gmra.mxu1 %vm243_vm3, %v657_v47 }
 0x370   :  { %v687_v8 = vpop.f32.mrf.mxu0 }
 0x371   :  { %v699_v60 = vsel %vm243_vm3, %v687_v8, 0.0 }
 0x374   :  { %v629_v62 = vpop.f32.mrf.mxu3 }
 0x375   :  { %v641_v6 = vsel %vm243_vm3, %v629_v62, 0.0 }
 0x378   :  { %v690_v57 = vpop.f32.mrf.mxu0 }
 0x379   :  { %v700_v3 = vsel %vm243_vm3, %v690_v57, 0.0 }
 0x37a   :  { %v701_v63 = vadd.f32 %v700_v3, %v699_v60 }
 0x37c   :  { %v632_v56 = vpop.f32.mrf.mxu3 }
 0x37d   :  { %v642_v2 = vsel %vm243_vm3, %v632_v56, 0.0 }
 0x37e   :  { %v643_v12 = vadd.f32 %v642_v2, %v641_v6 }
 0x380   :  { %v693_v58 = vpop.f32.mrf.mxu1 }
 0x381   :  { %v702_v61 = vsel %vm243_vm3, %v693_v58, 0.0 }
 0x382   :  { %v703_v4 = vadd.f32 %v702_v61, %v701_v63 }
 0x384   :  { %v635_v59 = vpop.f32.mrf.mxu3 }
 0x385   :  { %v644_v7 = vsel %vm243_vm3, %v635_v59, 0.0 }
 0x386   :  { %v645_v14 = vadd.f32 %v644_v7, %v643_v12 }
 0x388   :  { %v696_v5 = vpop.f32.mrf.mxu1 }
 0x389   :  { %v704_v9 = vsel %vm243_vm3, %v696_v5, 0.0 }
 0x38a   :  { %v705_v13 = vadd.f32 %v704_v9, %v703_v4 }
 0x38c   :  { %v706_v16 = vrot.slane %v705_v13, 4  ;;  %v638_v48 = vpop.f32.mrf.mxu3 }
 0x38d   :  { %v646_v49 = vsel %vm243_vm3, %v638_v48, 0.0 }
 0x38e   :  { %v707_v50 = vadd.f32 %v706_v16, %v705_v13  ;;  %v647_v51 = vadd.f32 %v646_v49, %v645_v14 }
 0x390   :  { %v708_v52 = vrot.slane %v707_v50, 2  ;;  %v648_v53 = vrot.slane %v647_v51, 4 }
 0x392   :  { %v709_v17 = vadd.f32 %v708_v52, %v707_v50  ;;  %v649_v54 = vadd.f32 %v648_v53, %v647_v51 }
 0x394   :  { %v650_v55 = vrot.slane %v649_v54, 2  ;;  %v710_v18 = vrot.slane %v709_v17, 1 }
 0x396   :  { %v651_v19 = vadd.f32 %v650_v55, %v649_v54  ;;  %v711_v21 = vadd.f32 %v710_v18, %v709_v17 }
 0x398   :  { %v652_v20 = vrot.slane %v651_v19, 1  ;;  %v713_v24 = vmul.f32 0.001953125, %v711_v21 }
 0x39a   :  { %v653_v22 = vadd.f32 %v652_v20, %v651_v19 }
 0x39c   :  { %v712_v23 = vmul.f32 0.001953125, %v653_v22 }
 0x39e   :  { %v714_v25 = vmul.f32 %v712_v23, %v712_v23 }
 0x3a0   :  { %v715_v26 = vsub.f32 %v713_v24, %v714_v25 }
 0x3a2   :  { %v717_v27 = vadd.f32 1e-05, %v715_v26 }
 0x3a4   :  { %871 = vrsqrt.f32 %v717_v27  ;;  %vm724_vm12 = vweird.f32 %v717_v27 }
 0x3aa   :  { %v872_v28 = vpop.eup %871 }
 0x3ab   :  { %v719_v30 = vmul.f32 %v872_v28, %v717_v27  ;;  %vm725_vm11 = vweird.f32 %v872_v28 }
 0x3ac   :  { %vm726_vm13 = vmor %vm724_vm12, %vm725_vm11 }
 0x3ad   :  { %v720_v31 = vmul.f32 %v872_v28, %v719_v30 }
 0x3af   :  { %v721_v32 = vmul.f32 0.5, %v720_v31 }
 0x3b1   :  { %v722_v33 = vsub.f32 1.5, %v721_v32 }
 0x3b3   :  { %v723_v36 = vmul.f32 %v872_v28, %v722_v33 }
 0x3b5   :  { %v727_v37 = vsel %vm726_vm13, %v872_v28, %v723_v36 }
 0x3b6   :  { %v728_v38 = vmul.f32 %v727_v37, %v716_v34 }
 0x3b8   :  { %v730_v40 = vmul.f32 %v728_v38, %v712_v23  ;;  %v733_v42 = vperm.slane %v728_v38, 0 }
 0x3ba   :  { %v731_v43 = vsub.f32 %v729_v39, %v730_v40  ;;  %v735_v44 = vmul.f32 %v733_v42, %v1321_v29  ;;  %v736_v45 = vmul.f32 %v733_v42, %v1328_v35  ;;  %v737_v15 = vmul.f32 %v733_v42, %v1335_v41 }
 0x3bb   :  { %v738_v47 = vmul.f32 %v733_v42, %v1342_v46 }
 0x3bc   :  { %v740_v62 = vperm.slane %v731_v43, 0 }
 0x3be   :  { %v742_v8 = vadd.f32 %v740_v62, %v735_v44  ;;  %v743_v56 = vadd.f32 %v740_v62, %v736_v45  ;;  %v744_v57 = vadd.f32 %v740_v62, %v737_v15  ;;  %v745_v58 = vadd.f32 %v740_v62, %v738_v47 }
 0x3c0   :  { %v746_v3 = vadd.f32 %v742_v8, %v957_v0  ;;  %v747_v29 = vadd.f32 %v743_v56, %v995_v10  ;;  %v748_v35 = vadd.f32 %v744_v57, %v962_v1  ;;  %v749_v41 = vadd.f32 %v745_v58, %v1000_v11 }
 0x3c2   :  { %750 = vst.msk [vmem:[#allocation4] sm:$0xff] %vm243_vm3, %v746_v3 }
 0x3c3   :  { %751 = vst.msk [vmem:[#allocation4 + $0x8] sm:$0xff] %vm243_vm3, %v747_v29 }
 0x3c4   :  { %752 = vst.msk [vmem:[#allocation4 + $0x10] sm:$0xff] %vm243_vm3, %v748_v35 }
 0x3c5   :  { %753 = vst.msk [vmem:[#allocation4 + $0x18] sm:$0xff] %vm243_vm3, %v749_v41 }
 0x3c6   :  { %766 = dma.vmem_to_hbm [thread:$0]  %s759_s11, 512, %s761_s12, [#allocation5], %s902_s14, %s902_s14, %s903_s9  }
 0x3c7   :  { %897 = dma.done.wait [#allocation5], 512  }
 0x3c8   :  { %898 = vsyncadd [#allocation5], 4294966784 }
 0x3c9   :  { %771 = vsyncpa [#allocation5], 1 }

</bundles_post_ra>
